<compile_context>
chip_gen: v6e
topology: v6e:2x2x1
jax: 0.10.0
libtpu: 0.0.40
codegen_flags: <defaults>
</compile_context>

<pallas_src>
import functools

import jax
import jax.numpy as jnp
from jax.experimental import pallas as pl
from jax.experimental.pallas import tpu as pltpu


def _round_up(x, m):
    return (x + m - 1) // m * m


def _tcn_fused_kernel(meta, matmul_dtype, x_ref, w_ref, b_ref, o_ref):
    """Whole TCN forward for one batch tile; activations never leave VMEM.

    meta: static dict with Bt, L, per-block slab offsets/dilations, fc offsets.
    x_ref: (Bt*L, Cin) f32   w_ref: bf16 weight slab   b_ref: f32 bias slab.
    """
    Bt, L = meta["Bt"], meta["L"]
    rows = Bt * L

    x = x_ref[...]                                           # (rows, Cin) f32

    # Hoisted once; reused by every causal mask in the kernel.
    t_in_seq = jax.lax.broadcasted_iota(jnp.int32, (rows, 1), 0) % L

    def W(sl):                          # static (offset, k) -> (k, C_PAD) bf16
        off, k = sl
        return w_ref[off:off + k, :]

    def BIAS(i):                        # static row index -> (1, C_PAD) f32
        return b_ref[i:i + 1, :]

    # f32 0/1 causal masks, built once per (dilation, width) and reused by
    # both convs of a block (JAX does not CSE broadcast_in_dim).
    mask_cache = {}

    def keep(d, width):
        if (d, width) not in mask_cache:
            m = (t_in_seq >= d).astype(jnp.float32)
            mask_cache[(d, width)] = jnp.broadcast_to(m, (rows, width))
        return mask_cache[(d, width)]

    def conv2tap(inp, w_sl, b_idx, d):
        # out[b,t] = inp[b,t-d] @ W_tap0 + inp[b,t] @ W_tap1 + bias   (causal)
        # The roll is on the flattened batch*time axis; rows with t < d would
        # wrap across sequences and are zeroed by the mask.
        width = inp.shape[1]
        shifted = pltpu.roll(inp, shift=d, axis=0) * keep(d, width)
        cat = jnp.concatenate([shifted, inp], axis=-1).astype(matmul_dtype)
        return jnp.dot(cat, W(w_sl), preferred_element_type=jnp.float32) + BIAS(b_idx)

    for blk in meta["blocks"]:
        d = blk["d"]
        # conv1 -> ReLU -> (dropout==id) -> conv2 -> ReLU -> (dropout==id)
        h = jnp.maximum(conv2tap(x, blk["w1"], blk["b1"], d), 0.0)
        y = jnp.maximum(conv2tap(h, blk["w2"], blk["b2"], d), 0.0)
        # residual (1x1 conv downsample when channel counts differ)
        if blk["wd"] is not None:
            res = jnp.dot(x.astype(matmul_dtype), W(blk["wd"]),
                          preferred_element_type=jnp.float32) + BIAS(blk["bd"])
        else:
            res = x
        x = jnp.maximum(y + res, 0.0)

    # FC head: tiny N-padded head matmul over ALL flattened rows (negligible
    # MXU cost), then pick the last-timestep row of each sequence out of the
    # (rows, 1) column — much cheaper than gathering (Bt, C_PAD) activations.
    yfull = jnp.dot(x.astype(matmul_dtype), W(meta["fc_w"]),
                    preferred_element_type=jnp.float32) + BIAS(meta["fc_b"])
    y = yfull[:, 0:1]                                        # real output = col 0
    o_ref[...] = y.reshape(Bt, L, 1)[:, L - 1, :]            # (Bt, 1)


def tcn_forward(x_ncw, block_params, fc_params, *, matmul_dtype=jnp.bfloat16):
    """Matches TCN.forward: x is PyTorch NCW (B, num_inputs, L) -> (B,) output."""
    x = jnp.transpose(x_ncw, (0, 2, 1)).astype(jnp.float32)   # (B, L, Cin)
    B, L, Cin = x.shape

    couts = [p["w1"].shape[1] for p in block_params]
    C_PAD = _round_up(max(couts), 128)        # lane-dense channel width

    # Block-0 identity residual needs a lane-padded input; otherwise keep the
    # raw Cin input (tiny DMA) and pad only the weights.
    pad_input = "wd" not in block_params[0]
    Cin_k = C_PAD if pad_input else Cin
    if Cin_k != Cin:
        x = jnp.pad(x, ((0, 0), (0, 0), (0, Cin_k - Cin)))

    # ---- batch tile: target ~2048 flattened rows per grid step, and >=2 grid
    # steps when the batch allows it (so v7x shards across both TensorCores).
    Bt = max(8, _round_up(pl.cdiv(2048, L), 8))
    if B <= Bt:
        if B >= 16 and B * L >= 1024:
            Bt = _round_up(pl.cdiv(B, 2), 8)     # >=2 steps for megacore
        else:
            Bt = B                                # whole (small) batch in one tile
    B_pad = _round_up(B, Bt)
    if B_pad != B:
        x = jnp.concatenate([x, jnp.zeros((B_pad - B, L, Cin_k), x.dtype)], axis=0)
    x_flat = x.reshape(B_pad * L, Cin_k)          # host reshape: free in XLA

    # ---- pack all weights into one bf16 slab and all biases into one f32 slab
    w_pieces, b_pieces = [], []

    def add_w(p):                                 # (k, C_PAD) -> (offset, k)
        k = int(p.shape[0])
        k_pad = _round_up(k, 8)                   # keep slices sublane-aligned
        if k_pad != k:
            p = jnp.pad(p, ((0, k_pad - k), (0, 0)))
        off = sum(int(q.shape[0]) for q in w_pieces)
        w_pieces.append(p.astype(matmul_dtype))
        return (off, k)

    def add_b(b):                                 # (1, C) -> slab row index
        b_pieces.append(jnp.pad(b.astype(jnp.float32),
                                ((0, 0), (0, C_PAD - b.shape[1]))))
        return len(b_pieces) - 1

    def prep_conv_w(w_stacked, cin, in_width):
        # (2*cin, cout) -> (2*in_width, C_PAD): pad each tap's K rows to the
        # (padded) activation width and its N cols to C_PAD, then restack.
        taps = [w_stacked[:cin], w_stacked[cin:]]
        taps = [jnp.pad(t, ((0, in_width - cin), (0, C_PAD - t.shape[1])))
                for t in taps]
        return jnp.concatenate(taps, axis=0)

    blocks_meta = []
    for idx, p in enumerate(block_params):
        cin_real = p["w1"].shape[0] // 2
        in_width = Cin_k if idx == 0 else C_PAD
        blk = {
            "d": int(p["dilation"]),
            "w1": add_w(prep_conv_w(p["w1"], cin_real, in_width)),
            "b1": add_b(p["b1"]),
            "w2": add_w(prep_conv_w(p["w2"], p["w2"].shape[0] // 2, C_PAD)),
            "b2": add_b(p["b2"]),
            "wd": None, "bd": None,
        }
        if "wd" in p:
            wd = jnp.pad(p["wd"], ((0, in_width - p["wd"].shape[0]),
                                   (0, C_PAD - p["wd"].shape[1])))
            blk["wd"] = add_w(wd)
            blk["bd"] = add_b(p["bd"])
        else:
            # identity residual requires matching channel counts
            assert cin_real == p["w1"].shape[1], "missing downsample"
        blocks_meta.append(blk)

    fcw = jnp.pad(fc_params["w"],
                  ((0, C_PAD - fc_params["w"].shape[0]),
                   (0, C_PAD - fc_params["w"].shape[1])))
    meta = {
        "Bt": Bt, "L": L, "blocks": blocks_meta,
        "fc_w": add_w(fcw), "fc_b": add_b(fc_params["b"]),
    }
    w_slab = jnp.concatenate(w_pieces, axis=0)        # (K_total, C_PAD) bf16
    b_slab = jnp.concatenate(b_pieces, axis=0)        # (n_bias,  C_PAD) f32

    kernel = functools.partial(_tcn_fused_kernel, meta, matmul_dtype)
    out = pl.pallas_call(
        kernel,
        grid=(B_pad // Bt,),
        in_specs=[
            pl.BlockSpec((Bt * L, Cin_k), lambda b: (b, 0)),
            pl.BlockSpec(w_slab.shape, lambda b: (0, 0)),   # constant operands:
            pl.BlockSpec(b_slab.shape, lambda b: (0, 0)),   # block index never moves
        ],
        out_specs=pl.BlockSpec((Bt, 1), lambda b: (b, 0)),
        out_shape=jax.ShapeDtypeStruct((B_pad, 1), jnp.float32),
        compiler_params=pltpu.CompilerParams(
            dimension_semantics=("parallel",),
            vmem_limit_bytes=32 * 1024 * 1024),
    )(x_flat, w_slab, b_slab)

    return jnp.squeeze(out[:B])   # == out.squeeze() (scalar when B == 1)


def init_params(key, num_inputs, num_channels, kernel_size=2):
    """Deterministic synthetic init mirroring the PyTorch parameter shapes.

    Conv weights (Cout, Cin, 2) are pre-stacked as (2*Cin, Cout):
      rows [0:Cin)    -> tap 0 (applied to x[t - dilation])
      rows [Cin:2Cin) -> tap 1 (applied to x[t])
    """
    assert kernel_size == 2  # kernel implements the 2-tap dilated conv

    def stack(w):  # (Cout, Cin, 2) -> (2*Cin, Cout)
        return jnp.concatenate(
            [jnp.transpose(w[:, :, 0]), jnp.transpose(w[:, :, 1])], axis=0)

    blocks = []
    in_c = num_inputs
    for i, out_c in enumerate(num_channels):
        key, k1, k2, k3, k4, k5, k6 = jax.random.split(key, 7)
        w1 = 0.01 * jax.random.normal(k1, (out_c, in_c, kernel_size), jnp.float32)
        b1 = 0.10 * jax.random.normal(k2, (out_c,), jnp.float32)
        w2 = 0.01 * jax.random.normal(k3, (out_c, out_c, kernel_size), jnp.float32)
        b2 = 0.10 * jax.random.normal(k4, (out_c,), jnp.float32)
        p = {
            "w1": stack(w1), "b1": b1.reshape(1, -1),
            "w2": stack(w2), "b2": b2.reshape(1, -1),
            "dilation": 2 ** i,
        }
        if in_c != out_c:  # downsample 1x1 conv
            wd = 0.01 * jax.random.normal(k5, (out_c, in_c, 1), jnp.float32)
            bd = 0.10 * jax.random.normal(k6, (out_c,), jnp.float32)
            p["wd"] = jnp.transpose(wd[:, :, 0])
            p["bd"] = bd.reshape(1, -1)
        blocks.append(p)
        in_c = out_c
    key, kf1, kf2 = jax.random.split(key, 3)
    fc_w = 0.05 * jax.random.normal(kf1, (1, num_channels[-1]), jnp.float32)
    fc_b = 0.10 * jax.random.normal(kf2, (1,), jnp.float32)
    fc = {"w": jnp.transpose(fc_w), "b": fc_b.reshape(1, 1)}
    return blocks, fc


def _ref_forward(x_ncw, block_params, fc_params):
    """Pure-JAX f32 reference with identical (causal/chomped) semantics."""
    x = jnp.transpose(x_ncw, (0, 2, 1)).astype(jnp.float32)   # (B, L, C)
    L = x.shape[1]
    for p in block_params:
        d = int(p["dilation"])

        def shift(a, d=d):
            return jnp.pad(a, ((0, 0), (d, 0), (0, 0)))[:, :L, :]

        def conv(a, w, b, d=d):
            cat = jnp.concatenate([shift(a, d), a], axis=-1)
            return jnp.einsum("blc,co->blo", cat, w) + b

        h = jax.nn.relu(conv(x, p["w1"], p["b1"]))
        y = jax.nn.relu(conv(h, p["w2"], p["b2"]))
        if "wd" in p:
            res = jnp.einsum("blc,co->blo", x, p["wd"]) + p["bd"]
        else:
            res = x
        x = jax.nn.relu(y + res)
    out = x[:, -1, :] @ fc_params["w"] + fc_params["b"]
    return jnp.squeeze(out)


if __name__ == "__main__":
    num_inputs, L = 4, 16
    num_channels = [32, 32, 32]
    kernel_size = 2

    key = jax.random.PRNGKey(0)
    kp, kx1, kx2 = jax.random.split(key, 3)
    block_params, fc_params = init_params(kp, num_inputs, num_channels, kernel_size)

    # Small batch (PyTorch-style NCW input) -> single grid step.
    x_small = jax.random.normal(kx1, (2, num_inputs, L), jnp.float32)
    out_s = jax.block_until_ready(tcn_forward(x_small, block_params, fc_params))
    ref_s = jax.block_until_ready(_ref_forward(x_small, block_params, fc_params))
    assert out_s.shape == (2,), out_s.shape
    assert jnp.all(jnp.isfinite(out_s))
    # bf16 matmul operands with f32 accumulation -> loose tolerance.
    assert jnp.allclose(out_s, ref_s, atol=2e-2, rtol=2e-2), (out_s, ref_s)

    # Larger batch exercising the multi-step "parallel" grid path.
    x_big = jax.random.normal(kx2, (64, num_inputs, L), jnp.float32)
    out_b = jax.block_until_ready(tcn_forward(x_big, block_params, fc_params))
    ref_b = jax.block_until_ready(_ref_forward(x_big, block_params, fc_params))
    assert out_b.shape == (64,), out_b.shape
    assert jnp.allclose(out_b, ref_b, atol=2e-2, rtol=2e-2)

    print("KERNEL_OK")
</pallas_src>

<mosaic_0001>
module attributes {stable_mosaic.version = 11 : i64} {
  func.func @_tcn_fused_kernel(%arg0: i32, %arg1: memref<32x4xf32, #tpu.memory_space<vmem>>, %arg2: memref<1424x128xbf16, #tpu.memory_space<vmem>>, %arg3: memref<8x128xf32, #tpu.memory_space<vmem>>, %arg4: memref<2x1xf32, #tpu.memory_space<vmem>>) attributes {dimension_semantics = [#tpu.dimension_semantics<parallel>], iteration_bounds = array<i64: 1>, scalar_prefetch = 0 : i64, scratch_operands = 0 : i64, tpu.core_type = #tpu.core_type<tc>, window_params = [{transform_indices = @transform_0, window_bounds = array<i64: 32, 4>}, {pipeline_mode = #tpu.pipeline_mode<synchronous>, transform_indices = @transform_1, window_bounds = array<i64: 1424, 128>}, {pipeline_mode = #tpu.pipeline_mode<synchronous>, transform_indices = @transform_2, window_bounds = array<i64: 8, 128>}, {transform_indices = @transform_3, window_bounds = array<i64: 2, 1>}]} {
    %c0 = arith.constant 0 : index
    %c0_0 = arith.constant 0 : index
    %0 = vector.load %arg1[%c0, %c0_0] : memref<32x4xf32, #tpu.memory_space<vmem>>, vector<32x4xf32>
    %1 = tpu.iota {dimensions = array<i32: 0>} : vector<32x1xi32>
    %c16_i32 = arith.constant 16 : i32
    %c0_i32 = arith.constant 0 : i32
    %2 = arith.cmpi eq, %c16_i32, %c0_i32 : i32
    %c1_i32 = arith.constant 1 : i32
    %3 = arith.select %2, %c1_i32, %c16_i32 : i32
    %4 = vector.broadcast %3 : i32 to vector<32x1xi32>
    %5 = arith.remsi %1, %4 : vector<32x1xi32>
    %c0_i32_1 = arith.constant 0 : i32
    %6 = vector.broadcast %c0_i32_1 : i32 to vector<32x1xi32>
    %7 = arith.cmpi ne, %5, %6 : vector<32x1xi32>
    %c0_i32_2 = arith.constant 0 : i32
    %8 = vector.broadcast %c0_i32_2 : i32 to vector<32x1xi32>
    %9 = arith.cmpi slt, %5, %8 : vector<32x1xi32>
    %c0_i32_3 = arith.constant 0 : i32
    %10 = arith.cmpi slt, %3, %c0_i32_3 : i32
    %11 = vector.broadcast %10 : i1 to vector<32x1xi1>
    %12 = vector.broadcast %11 : vector<32x1xi1> to vector<32x1xi1>
    %13 = arith.xori %9, %12 : vector<32x1xi1>
    %14 = arith.andi %13, %7 : vector<32x1xi1>
    %15 = vector.broadcast %3 : i32 to vector<32x1xi32>
    %16 = arith.addi %5, %15 : vector<32x1xi32>
    %17 = arith.select %14, %16, %5 : vector<32x1xi1>, vector<32x1xi32>
    %c1_i32_4 = arith.constant 1 : i32
    %18 = tpu.dynamic_rotate %0 by %c1_i32_4 dim 0 : vector<32x4xf32>, i32 -> vector<32x4xf32>
    %c1_i32_5 = arith.constant 1 : i32
    %19 = vector.broadcast %c1_i32_5 : i32 to vector<32x1xi32>
    %20 = arith.cmpi sge, %17, %19 : vector<32x1xi32>
    %21 = arith.extui %20 : vector<32x1xi1> to vector<32x1xi32>
    %22 = arith.sitofp %21 : vector<32x1xi32> to vector<32x1xf32>
    %23 = vector.shape_cast %22 : vector<32x1xf32> to vector<32x1xf32>
    %24 = vector.broadcast %23 : vector<32x1xf32> to vector<32x4xf32>
    %25 = arith.mulf %18, %24 : vector<32x4xf32>
    %26 = tpu.concatenate %25, %0 in 1 : vector<32x4xf32>, vector<32x4xf32> -> vector<32x8xf32>
    %27 = arith.truncf %26 : vector<32x8xf32> to vector<32x8xbf16>
    %c0_6 = arith.constant 0 : index
    %c0_7 = arith.constant 0 : index
    %28 = vector.load %arg2[%c0_6, %c0_7] : memref<1424x128xbf16, #tpu.memory_space<vmem>>, vector<8x128xbf16>
    %cst = arith.constant dense<0.000000e+00> : vector<32x128xf32>
    %29 = tpu.matmul %27, %28, %cst {dimension_numbers = #tpu.dot_dimension_numbers<[1], [0], [0], [1], [0, 0, 1, 1], [], []>} : vector<32x8xbf16>, vector<8x128xbf16>, vector<32x128xf32> -> vector<32x128xf32>
    %c0_8 = arith.constant 0 : index
    %c0_9 = arith.constant 0 : index
    %30 = vector.load %arg3[%c0_8, %c0_9] : memref<8x128xf32, #tpu.memory_space<vmem>>, vector<1x128xf32>
    %31 = vector.broadcast %30 : vector<1x128xf32> to vector<32x128xf32>
    %32 = arith.addf %29, %31 : vector<32x128xf32>
    %cst_10 = arith.constant 0.000000e+00 : f32
    %33 = vector.broadcast %cst_10 : f32 to vector<32x128xf32>
    %34 = arith.maximumf %32, %33 : vector<32x128xf32>
    %c1_i32_11 = arith.constant 1 : i32
    %35 = tpu.dynamic_rotate %34 by %c1_i32_11 dim 0 : vector<32x128xf32>, i32 -> vector<32x128xf32>
    %c1_i32_12 = arith.constant 1 : i32
    %36 = vector.broadcast %c1_i32_12 : i32 to vector<32x1xi32>
    %37 = arith.cmpi sge, %17, %36 : vector<32x1xi32>
    %38 = arith.extui %37 : vector<32x1xi1> to vector<32x1xi32>
    %39 = arith.sitofp %38 : vector<32x1xi32> to vector<32x1xf32>
    %40 = vector.shape_cast %39 : vector<32x1xf32> to vector<32x1xf32>
    %41 = vector.broadcast %40 : vector<32x1xf32> to vector<32x128xf32>
    %42 = arith.mulf %35, %41 : vector<32x128xf32>
    %43 = tpu.concatenate %42, %34 in 1 : vector<32x128xf32>, vector<32x128xf32> -> vector<32x256xf32>
    %44 = arith.truncf %43 : vector<32x256xf32> to vector<32x256xbf16>
    %c8 = arith.constant 8 : index
    %c0_13 = arith.constant 0 : index
    %45 = vector.load %arg2[%c8, %c0_13] : memref<1424x128xbf16, #tpu.memory_space<vmem>>, vector<256x128xbf16>
    %cst_14 = arith.constant dense<0.000000e+00> : vector<32x128xf32>
    %46 = tpu.matmul %44, %45, %cst_14 {dimension_numbers = #tpu.dot_dimension_numbers<[1], [0], [0], [1], [0, 0, 1, 1], [], []>} : vector<32x256xbf16>, vector<256x128xbf16>, vector<32x128xf32> -> vector<32x128xf32>
    %c1 = arith.constant 1 : index
    %c0_15 = arith.constant 0 : index
    %47 = vector.load %arg3[%c1, %c0_15] : memref<8x128xf32, #tpu.memory_space<vmem>>, vector<1x128xf32>
    %48 = vector.broadcast %47 : vector<1x128xf32> to vector<32x128xf32>
    %49 = arith.addf %46, %48 : vector<32x128xf32>
    %cst_16 = arith.constant 0.000000e+00 : f32
    %50 = vector.broadcast %cst_16 : f32 to vector<32x128xf32>
    %51 = arith.maximumf %49, %50 : vector<32x128xf32>
    %52 = arith.truncf %0 : vector<32x4xf32> to vector<32x4xbf16>
    %c264 = arith.constant 264 : index
    %c0_17 = arith.constant 0 : index
    %53 = vector.load %arg2[%c264, %c0_17] : memref<1424x128xbf16, #tpu.memory_space<vmem>>, vector<4x128xbf16>
    %cst_18 = arith.constant dense<0.000000e+00> : vector<32x128xf32>
    %54 = tpu.matmul %52, %53, %cst_18 {dimension_numbers = #tpu.dot_dimension_numbers<[1], [0], [0], [1], [0, 0, 1, 1], [], []>} : vector<32x4xbf16>, vector<4x128xbf16>, vector<32x128xf32> -> vector<32x128xf32>
    %c2 = arith.constant 2 : index
    %c0_19 = arith.constant 0 : index
    %55 = vector.load %arg3[%c2, %c0_19] : memref<8x128xf32, #tpu.memory_space<vmem>>, vector<1x128xf32>
    %56 = vector.broadcast %55 : vector<1x128xf32> to vector<32x128xf32>
    %57 = arith.addf %54, %56 : vector<32x128xf32>
    %58 = arith.addf %51, %57 : vector<32x128xf32>
    %cst_20 = arith.constant 0.000000e+00 : f32
    %59 = vector.broadcast %cst_20 : f32 to vector<32x128xf32>
    %60 = arith.maximumf %58, %59 : vector<32x128xf32>
    %c2_i32 = arith.constant 2 : i32
    %61 = tpu.dynamic_rotate %60 by %c2_i32 dim 0 : vector<32x128xf32>, i32 -> vector<32x128xf32>
    %c2_i32_21 = arith.constant 2 : i32
    %62 = vector.broadcast %c2_i32_21 : i32 to vector<32x1xi32>
    %63 = arith.cmpi sge, %17, %62 : vector<32x1xi32>
    %64 = arith.extui %63 : vector<32x1xi1> to vector<32x1xi32>
    %65 = arith.sitofp %64 : vector<32x1xi32> to vector<32x1xf32>
    %66 = vector.shape_cast %65 : vector<32x1xf32> to vector<32x1xf32>
    %67 = vector.broadcast %66 : vector<32x1xf32> to vector<32x128xf32>
    %68 = arith.mulf %61, %67 : vector<32x128xf32>
    %69 = tpu.concatenate %68, %60 in 1 : vector<32x128xf32>, vector<32x128xf32> -> vector<32x256xf32>
    %70 = arith.truncf %69 : vector<32x256xf32> to vector<32x256xbf16>
    %c272 = arith.constant 272 : index
    %c0_22 = arith.constant 0 : index
    %71 = vector.load %arg2[%c272, %c0_22] : memref<1424x128xbf16, #tpu.memory_space<vmem>>, vector<256x128xbf16>
    %cst_23 = arith.constant dense<0.000000e+00> : vector<32x128xf32>
    %72 = tpu.matmul %70, %71, %cst_23 {dimension_numbers = #tpu.dot_dimension_numbers<[1], [0], [0], [1], [0, 0, 1, 1], [], []>} : vector<32x256xbf16>, vector<256x128xbf16>, vector<32x128xf32> -> vector<32x128xf32>
    %c3 = arith.constant 3 : index
    %c0_24 = arith.constant 0 : index
    %73 = vector.load %arg3[%c3, %c0_24] : memref<8x128xf32, #tpu.memory_space<vmem>>, vector<1x128xf32>
    %74 = vector.broadcast %73 : vector<1x128xf32> to vector<32x128xf32>
    %75 = arith.addf %72, %74 : vector<32x128xf32>
    %cst_25 = arith.constant 0.000000e+00 : f32
    %76 = vector.broadcast %cst_25 : f32 to vector<32x128xf32>
    %77 = arith.maximumf %75, %76 : vector<32x128xf32>
    %c2_i32_26 = arith.constant 2 : i32
    %78 = tpu.dynamic_rotate %77 by %c2_i32_26 dim 0 : vector<32x128xf32>, i32 -> vector<32x128xf32>
    %79 = arith.mulf %78, %67 : vector<32x128xf32>
    %80 = tpu.concatenate %79, %77 in 1 : vector<32x128xf32>, vector<32x128xf32> -> vector<32x256xf32>
    %81 = arith.truncf %80 : vector<32x256xf32> to vector<32x256xbf16>
    %c528 = arith.constant 528 : index
    %c0_27 = arith.constant 0 : index
    %82 = vector.load %arg2[%c528, %c0_27] : memref<1424x128xbf16, #tpu.memory_space<vmem>>, vector<256x128xbf16>
    %cst_28 = arith.constant dense<0.000000e+00> : vector<32x128xf32>
    %83 = tpu.matmul %81, %82, %cst_28 {dimension_numbers = #tpu.dot_dimension_numbers<[1], [0], [0], [1], [0, 0, 1, 1], [], []>} : vector<32x256xbf16>, vector<256x128xbf16>, vector<32x128xf32> -> vector<32x128xf32>
    %c4 = arith.constant 4 : index
    %c0_29 = arith.constant 0 : index
    %84 = vector.load %arg3[%c4, %c0_29] : memref<8x128xf32, #tpu.memory_space<vmem>>, vector<1x128xf32>
    %85 = vector.broadcast %84 : vector<1x128xf32> to vector<32x128xf32>
    %86 = arith.addf %83, %85 : vector<32x128xf32>
    %cst_30 = arith.constant 0.000000e+00 : f32
    %87 = vector.broadcast %cst_30 : f32 to vector<32x128xf32>
    %88 = arith.maximumf %86, %87 : vector<32x128xf32>
    %89 = arith.addf %88, %60 : vector<32x128xf32>
    %cst_31 = arith.constant 0.000000e+00 : f32
    %90 = vector.broadcast %cst_31 : f32 to vector<32x128xf32>
    %91 = arith.maximumf %89, %90 : vector<32x128xf32>
    %c4_i32 = arith.constant 4 : i32
    %92 = tpu.dynamic_rotate %91 by %c4_i32 dim 0 : vector<32x128xf32>, i32 -> vector<32x128xf32>
    %c4_i32_32 = arith.constant 4 : i32
    %93 = vector.broadcast %c4_i32_32 : i32 to vector<32x1xi32>
    %94 = arith.cmpi sge, %17, %93 : vector<32x1xi32>
    %95 = arith.extui %94 : vector<32x1xi1> to vector<32x1xi32>
    %96 = arith.sitofp %95 : vector<32x1xi32> to vector<32x1xf32>
    %97 = vector.shape_cast %96 : vector<32x1xf32> to vector<32x1xf32>
    %98 = vector.broadcast %97 : vector<32x1xf32> to vector<32x128xf32>
    %99 = arith.mulf %92, %98 : vector<32x128xf32>
    %100 = tpu.concatenate %99, %91 in 1 : vector<32x128xf32>, vector<32x128xf32> -> vector<32x256xf32>
    %101 = arith.truncf %100 : vector<32x256xf32> to vector<32x256xbf16>
    %c784 = arith.constant 784 : index
    %c0_33 = arith.constant 0 : index
    %102 = vector.load %arg2[%c784, %c0_33] : memref<1424x128xbf16, #tpu.memory_space<vmem>>, vector<256x128xbf16>
    %cst_34 = arith.constant dense<0.000000e+00> : vector<32x128xf32>
    %103 = tpu.matmul %101, %102, %cst_34 {dimension_numbers = #tpu.dot_dimension_numbers<[1], [0], [0], [1], [0, 0, 1, 1], [], []>} : vector<32x256xbf16>, vector<256x128xbf16>, vector<32x128xf32> -> vector<32x128xf32>
    %c5 = arith.constant 5 : index
    %c0_35 = arith.constant 0 : index
    %104 = vector.load %arg3[%c5, %c0_35] : memref<8x128xf32, #tpu.memory_space<vmem>>, vector<1x128xf32>
    %105 = vector.broadcast %104 : vector<1x128xf32> to vector<32x128xf32>
    %106 = arith.addf %103, %105 : vector<32x128xf32>
    %cst_36 = arith.constant 0.000000e+00 : f32
    %107 = vector.broadcast %cst_36 : f32 to vector<32x128xf32>
    %108 = arith.maximumf %106, %107 : vector<32x128xf32>
    %c4_i32_37 = arith.constant 4 : i32
    %109 = tpu.dynamic_rotate %108 by %c4_i32_37 dim 0 : vector<32x128xf32>, i32 -> vector<32x128xf32>
    %110 = arith.mulf %109, %98 : vector<32x128xf32>
    %111 = tpu.concatenate %110, %108 in 1 : vector<32x128xf32>, vector<32x128xf32> -> vector<32x256xf32>
    %112 = arith.truncf %111 : vector<32x256xf32> to vector<32x256xbf16>
    %c1040 = arith.constant 1040 : index
    %c0_38 = arith.constant 0 : index
    %113 = vector.load %arg2[%c1040, %c0_38] : memref<1424x128xbf16, #tpu.memory_space<vmem>>, vector<256x128xbf16>
    %cst_39 = arith.constant dense<0.000000e+00> : vector<32x128xf32>
    %114 = tpu.matmul %112, %113, %cst_39 {dimension_numbers = #tpu.dot_dimension_numbers<[1], [0], [0], [1], [0, 0, 1, 1], [], []>} : vector<32x256xbf16>, vector<256x128xbf16>, vector<32x128xf32> -> vector<32x128xf32>
    %c6 = arith.constant 6 : index
    %c0_40 = arith.constant 0 : index
    %115 = vector.load %arg3[%c6, %c0_40] : memref<8x128xf32, #tpu.memory_space<vmem>>, vector<1x128xf32>
    %116 = vector.broadcast %115 : vector<1x128xf32> to vector<32x128xf32>
    %117 = arith.addf %114, %116 : vector<32x128xf32>
    %cst_41 = arith.constant 0.000000e+00 : f32
    %118 = vector.broadcast %cst_41 : f32 to vector<32x128xf32>
    %119 = arith.maximumf %117, %118 : vector<32x128xf32>
    %120 = arith.addf %119, %91 : vector<32x128xf32>
    %cst_42 = arith.constant 0.000000e+00 : f32
    %121 = vector.broadcast %cst_42 : f32 to vector<32x128xf32>
    %122 = arith.maximumf %120, %121 : vector<32x128xf32>
    %123 = arith.truncf %122 : vector<32x128xf32> to vector<32x128xbf16>
    %c1296 = arith.constant 1296 : index
    %c0_43 = arith.constant 0 : index
    %124 = vector.load %arg2[%c1296, %c0_43] : memref<1424x128xbf16, #tpu.memory_space<vmem>>, vector<128x128xbf16>
    %cst_44 = arith.constant dense<0.000000e+00> : vector<32x128xf32>
    %125 = tpu.matmul %123, %124, %cst_44 {dimension_numbers = #tpu.dot_dimension_numbers<[1], [0], [0], [1], [0, 0, 1, 1], [], []>} : vector<32x128xbf16>, vector<128x128xbf16>, vector<32x128xf32> -> vector<32x128xf32>
    %c7 = arith.constant 7 : index
    %c0_45 = arith.constant 0 : index
    %126 = vector.load %arg3[%c7, %c0_45] : memref<8x128xf32, #tpu.memory_space<vmem>>, vector<1x128xf32>
    %127 = vector.broadcast %126 : vector<1x128xf32> to vector<32x128xf32>
    %128 = arith.addf %125, %127 : vector<32x128xf32>
    %129 = vector.extract_strided_slice %128 {offsets = [0, 0], sizes = [32, 1], strides = [1, 1]} : vector<32x128xf32> to vector<32x1xf32>
    %130 = vector.shape_cast %129 : vector<32x1xf32> to vector<2x16x1xf32>
    %131 = vector.extract_strided_slice %130 {offsets = [0, 15, 0], sizes = [2, 1, 1], strides = [1, 1, 1]} : vector<2x16x1xf32> to vector<2x1x1xf32>
    %132 = vector.shape_cast %131 : vector<2x1x1xf32> to vector<2x1xf32>
    %c0_46 = arith.constant 0 : index
    %c0_47 = arith.constant 0 : index
    %133 = vector.load %arg4[%c0_46, %c0_47] : memref<2x1xf32, #tpu.memory_space<vmem>>, vector<2x1xf32>
    tpu.vector_store %arg4[%c0_46, %c0_47], %132 {strides = array<i32>} : memref<2x1xf32, #tpu.memory_space<vmem>>, vector<2x1xf32>,
    return
  }
  func.func @transform_0(%arg0: i32) -> (i32, i32) {
    %c0_i32 = arith.constant 0 : i32
    %c0_i32_0 = arith.constant 0 : i32
    return %arg0, %c0_i32 : i32, i32
  }
  func.func @transform_1(%arg0: i32) -> (i32, i32) {
    %c0_i32 = arith.constant 0 : i32
    %c0_i32_0 = arith.constant 0 : i32
    %c0_i32_1 = arith.constant 0 : i32
    return %c0_i32, %c0_i32_0 : i32, i32
  }
  func.func @transform_2(%arg0: i32) -> (i32, i32) {
    %c0_i32 = arith.constant 0 : i32
    %c0_i32_0 = arith.constant 0 : i32
    %c0_i32_1 = arith.constant 0 : i32
    return %c0_i32, %c0_i32_0 : i32, i32
  }
  func.func @transform_3(%arg0: i32) -> (i32, i32) {
    %c0_i32 = arith.constant 0 : i32
    %c0_i32_0 = arith.constant 0 : i32
    return %arg0, %c0_i32 : i32, i32
  }
}

</mosaic_0001>

<bundles_post_ra>
// kernel: tpu_custom_call.1
= control target key start
LH: loop header
LB: loop body
LE: loop exit
PB: predicated region body
PF: predicated region fallthrough
CT: control target
= control target key end

     0   :  { %8 = vsyncpa [#allocation3], 0  ;;  %s1883_s12 = smov [#allocation2]   ;;  %s2121_s0 = inlined_call_operand.vmem [shape: f32[32,4], index: 0, kind: input, shape index: {}]   ;;  %s2122_s1 = inlined_call_operand.hbm [shape: bf16[1424,128], index: 1, kind: input, shape index: {}]   ;;  %s2123_s2 = inlined_call_operand.vmem [shape: f32[8,128], index: 2, kind: input, shape index: {}]   ;;  %s2124_s3 = inlined_call_operand.vmem [shape: f32[2,1], index: 3, kind: output, shape index: {}]  }
   0x1   :  { %s16_s13 = sshll.u32 %s1883_s12, 4  ;;  %s17_s13 = int_to_ptr.vmem [resolvable:$true] %s16_s13 }
   0x2   :  { %s1869_s14 = scalar_lea.vmem %s17_s13, 11392  ;;  %p1874_p1 = scmp.lt.s32.totalorder %s17_s13, %s17_s13 }
   0x3   :  { %p1870_p0 = scmp.ne.s32.totalorder %s17_s13, %s1869_s14  ;;  %p1875_p2 = scmp.lt.s32.totalorder %s1869_s14, %s1869_s14 }
   0x5   :  { %p1876_p3 = por %p1875_p2, %p1874_p1 }
   0x7   :  { %p1877_p4 = pnand %p1876_p3, %p1870_p0 }
   0x9   :  { %1880 = shalt.err (!%p1877_p4)
}
   0xa   :  { %s1884_s15 = smov 64   ;;  %s1885_s16 = smov 4  }
   0xb   :  { %22 = dma.hbm_to_vmem [thread:$0]  %s2122_s1, 11392, %s17_s13, [#allocation3], %s1884_s15, %s1884_s15, %s1885_s16  }
   0xc   :  { %1881 = dma.done.wait [#allocation3], 11392  }
   0xd   :  { %1882 = vsyncadd [#allocation3], 4294955904  ;;  %v33_v0 = vlaneseq  ;;  %vm147_vm0 = vcmask 1043456   ;;  %v1916_v2 = vld [vmem:[%s2121_s0] sm:$0xff]  ;;  %v1921_v3 = vld [vmem:[%s2121_s0 + $0x8] sm:$0xff]  ;;  %v1886_v31 = vmov 0.0  }
   0xe   :  { %v1926_v4 = vld [vmem:[%s2121_s0 + $0x10] sm:$0xff]  ;;  %v87_v5 = vrot.slane %v1921_v3, 7  ;;  %v1763_v6 = vpack.i.bf16 %v1921_v3, %v1916_v2  ;;  %v86_v7 = vrot.slane %v1916_v2, 7  ;;  %v406_v8 = vpack.c.bf16 %v1921_v3, %v1916_v2  ;;  %v1938_v9 = vld [vmem:[%s2121_s0 + $0x18] sm:$0xff]  ;;  %v134_v10 = vld [vmem:[#allocation2] sm:$0xf] }
   0xf   :  { %v1911_v1 = vshrl.u32 %v33_v0, 7  ;;  %v1773_v11 = vld [vmem:[#allocation2 + $0x7c] sm:$0xff]   ;;  %v89_v12 = vrot.slane %v1938_v9, 7  ;;  %v88_v13 = vrot.slane %v1926_v4, 7  ;;  %v407_v14 = vpack.c.bf16 %v1938_v9, %v1926_v4  ;;  %1757 = vmatprep.subr.msk.bf16.mxu0 %vm147_vm0, %v134_v10  ;;  %v1775_v22 = vld [vmem:[#allocation2 + $0x74] sm:$0xff]   ;;  %v1777_v24 = vld [vmem:[#allocation2 + $0x6c] sm:$0xff]  }
  0x10   :  { %1764 = vrot.lane.b32.xlu0 %v1763_v6, %s1885_s16  ;;  %v1768_v15 = vpack.i.bf16 %v1938_v9, %v1926_v4  ;;  %v149_v17 = vsel %vm147_vm0, %v134_v10, 0  ;;  %1572 = vmatprep.subr.bf16.mxu1 %v1773_v11  ;;  %v1774_v21 = vld [vmem:[#allocation2 + $0x3c] sm:$0xff]   ;;  %v1776_v23 = vld [vmem:[#allocation2 + $0x34] sm:$0xff]   ;;  %v1778_v25 = vld [vmem:[#allocation2 + $0x2c] sm:$0xff]   ;;  %vm127_vm4 = vcmask 31744   ;;  %vm140_vm5 = vcmask 64512  }
  0x11   :  { %vm90_vm1 = vcmp.lt.s32.totalorder %v1911_v1, 1  ;;  %1726 = vmatpush3.bf16.msra.mxu0 %v149_v17  ;;  %1573 = vmatpush3.bf16.msra.mxu1 %v1774_v21  ;;  %v1779_v26 = vld [vmem:[#allocation2 + $0x64] sm:$0xff]   ;;  %v36_v28 = vadd.s32 16, %v1911_v1  ;;  %v1960_v29 = vand.u32 15, %v1911_v1  ;;  %v1781_v48 = vld [vmem:[#allocation2 + $0x5c] sm:$0xff]   ;;  %v1783_v50 = vld [vmem:[#allocation2 + $0x54] sm:$0xff]  }
  0x12   :  { %v93_v16 = vsel %vm90_vm1, %v86_v7, %v87_v5  ;;  %v91_v18 = vsel %vm90_vm1, %v88_v13, %v89_v12  ;;  %v92_v19 = vsel %vm90_vm1, %v87_v5, %v88_v13  ;;  %v94_v20 = vsel %vm90_vm1, %v89_v12, %v86_v7  ;;  %1574 = vmatprep.subr.bf16.mxu1 %v1775_v22  ;;  %v1780_v27 = vld [vmem:[#allocation2 + $0x24] sm:$0xff]   ;;  %v1782_v49 = vld [vmem:[#allocation2 + $0x1c] sm:$0xff]   ;;  %v1784_v51 = vld [vmem:[#allocation2 + $0x14] sm:$0xff]  }
  0x13   :  { %v1962_v30 = vand.u32 15, %v36_v28  ;;  %vm95_vm2 = vcmp.ge.s32.totalorder %v1960_v29, 1  ;;  %v1785_v52 = vld [vmem:[#allocation2 + $0x4c] sm:$0xff]   ;;  %v1787_v54 = vld [vmem:[#allocation2 + $0x44] sm:$0xff]   ;;  %vm420_vm6 = vcmask 1041408   ;;  %vm490_vm7 = vcmp.ge.s32.totalorder %v1960_v29, 2 }
  0x14   :  { %1769 = vrot.lane.b32.xlu0 %v1768_v15, %s1885_s16  ;;  %v1966_v32 = vsel %vm95_vm2, 1.0, %v1886_v31  ;;  %v1786_v53 = vld [vmem:[#allocation2 + $0xc] sm:$0xff]   ;;  %v1788_v55 = vld [vmem:[#allocation2 + $0x4] sm:$0xff]   ;;  %v1465_v59 = vld [vmem:[%s2123_s2] ss:$0 sm:$0xff]  ;;  %vm485_vm8 = vcmp.lt.s32.totalorder %v1911_v1, 2 }
  0x15   :  { %1575 = vmatpush3.bf16.msra.mxu1 %v1776_v23  ;;  %vm97_vm3 = vcmp.ge.s32.totalorder %v1962_v30, 1  ;;  %v107_v33 = vmul.f32 %v1966_v32, %v94_v20  ;;  %v408_v56 = vld [vmem:[#allocation2 + $0x84] sm:$0x3]  ;;  %v1795_v28 = vld [vmem:[#allocation2 + $0xe8] sm:$0xff]   ;;  %vm492_vm9 = vcmp.ge.s32.totalorder %v1962_v30, 2  ;;  %vm915_vm10 = vcmp.ge.s32.totalorder %v1960_v29, 4 }
  0x16   :  { %1576 = vmatprep.subr.bf16.mxu1 %v1777_v24  ;;  %v1971_v35 = vsel %vm97_vm3, 1.0, %v1886_v31  ;;  %1758 = vmatprep.subr.msk.bf16.mxu0 %vm420_vm6, %v408_v56  ;;  %v422_v57 = vsel %vm420_vm6, %v408_v56, 0  ;;  %v1789_v22 = vld [vmem:[#allocation2 + $0x100] sm:$0xff]   ;;  %v1791_v24 = vld [vmem:[#allocation2 + $0xf8] sm:$0xff]   ;;  %vm910_vm11 = vcmp.lt.s32.totalorder %v1911_v1, 4  ;;  %vm917_vm12 = vcmp.ge.s32.totalorder %v1962_v30, 4 }
  0x17   :  { %v109_v38 = vmul.f32 %v1971_v35, %v92_v19  ;;  %v1790_v23 = vld [vmem:[#allocation2 + $0xc0] sm:$0xff]   ;;  %v1840_v30 = vld [vmem:[#allocation2 + $0x238] sm:$0xff]   ;;  %v1860_v1 = vld [vmem:[#allocation2 + $0x288] sm:$0xff]   ;;  %vm1456_vm13 = vcmask 0   ;;  %vm1454_vm14 = vcmask 7175  }
  0x19   :  { %1577 = vmatpush3.bf16.msra.mxu1 %v1778_v25  ;;  %v1792_v25 = vld [vmem:[#allocation2 + $0xb8] sm:$0xff]  }
  0x1a   :  { %1578 = vmatprep.subr.bf16.mxu1 %v1779_v26  ;;  %v1793_v26 = vld [vmem:[#allocation2 + $0xf0] sm:$0xff]  }
  0x1d   :  { %1579 = vmatpush3.bf16.msra.mxu1 %v1780_v27  ;;  %v1794_v27 = vld [vmem:[#allocation2 + $0xb0] sm:$0xff]  }
  0x1e   :  { %1580 = vmatprep.subr.bf16.mxu1 %v1781_v48 }
  0x21   :  { %1581 = vmatpush3.bf16.msra.mxu1 %v1782_v49 }
  0x22   :  { %1582 = vmatprep.subr.bf16.mxu1 %v1783_v50 }
  0x25   :  { %1583 = vmatpush3.bf16.msra.mxu1 %v1784_v51  ;;  %v1485_v51 = vld [vmem:[%s2123_s2 + $0x2] ss:$0 sm:$0xff] }
  0x26   :  { %1584 = vmatprep.subr.bf16.mxu1 %v1785_v52 }
  0x29   :  { %1585 = vmatpush3.bf16.msra.mxu1 %v1786_v53 }
  0x2a   :  { %1586 = vmatprep.subr.bf16.mxu1 %v1787_v54 }
  0x2d   :  { %1587 = vmatpush3.bf16.msra.mxu1 %v1788_v55 }
  0x82   :  { %v1765_v34 = vpop.permute.xlu0 %1764 }
  0x83   :  { %v1767_v36 = vunpack.i.h.bf16 %v1765_v34  ;;  %v1766_v37 = vunpack.i.l.bf16 %v1765_v34  ;;  %v1798_v34 = vld [vmem:[#allocation2 + $0xa0] sm:$0xff]  }
  0x85   :  { %v128_v39 = vsel %vm127_vm4, %v107_v33, %v1766_v37  ;;  %v129_v40 = vsel %vm127_vm4, %v93_v16, %v1767_v36  ;;  %v1797_v33 = vld [vmem:[#allocation2 + $0xe0] sm:$0xff]   ;;  %v1800_v36 = vld [vmem:[#allocation2 + $0x98] sm:$0xff]   ;;  %v1801_v37 = vld [vmem:[#allocation2 + $0xd0] sm:$0xff]  }
  0x86   :  { %v1770_v41 = vpop.permute.xlu0 %1769  ;;  %v132_v42 = vpack.c.bf16 %v129_v40, %v128_v39  ;;  %v1803_v39 = vld [vmem:[#allocation2 + $0xc8] sm:$0xff]  }
  0x87   :  { %v1772_v43 = vunpack.i.h.bf16 %v1770_v41  ;;  %v1771_v44 = vunpack.i.l.bf16 %v1770_v41  ;;  %v1804_v40 = vld [vmem:[#allocation2 + $0x88] sm:$0xff]   ;;  %v1805_v41 = vld [vmem:[#allocation2 + $0x180] sm:$0xff]  }
  0x88   :  { %1727 = vmatprep.mubr.msk.bf16.mxu0 %vm140_vm5, %v132_v42  ;;  %v1806_v42 = vld [vmem:[#allocation2 + $0x140] sm:$0xff]   ;;  %1631 = vmatprep.subr.bf16.mxu1 %v1805_v41  ;;  %v1811_v41 = vld [vmem:[#allocation2 + $0x168] sm:$0xff]  }
  0x89   :  { %v131_v45 = vsel %vm127_vm4, %v91_v18, %v1772_v43  ;;  %v130_v46 = vsel %vm127_vm4, %v109_v38, %v1771_v44  ;;  %v1802_v38 = vld [vmem:[#allocation2 + $0x90] sm:$0xff]  }
  0x8a   :  { %v133_v47 = vpack.c.bf16 %v131_v45, %v130_v46  ;;  %v1468_v46 = vld [vmem:[%s2123_s2 + $0x1] ss:$0 sm:$0xff] }
  0x8c   :  { %1728 = vmatmul.mubr.msk.bf16.vlgmr.msra.gmra.mxu0 %vm140_vm5, %v133_v47 }
  0x8d   :  { %1733 = vmatprep.mubr.msk.bf16.mxu0 %vm127_vm4, %v406_v8  ;;  %1732 = vmatpush3.bf16.msra.mxu0 %v422_v57 }
  0x8e   :  { %1603 = vmatprep.subr.bf16.mxu0 %v1789_v22 }
  0x94   :  { %1734 = vmatmul.mubr.msk.bf16.vlgmr.msra.gmra.mxu0 %vm127_vm4, %v407_v14 }
  0x95   :  { %1604 = vmatpush3.bf16.msra.mxu0 %v1790_v23 }
  0x96   :  { %1605 = vmatprep.subr.bf16.mxu0 %v1791_v24 }
  0x99   :  { %1606 = vmatpush3.bf16.msra.mxu0 %v1792_v25 }
  0x9a   :  { %1607 = vmatprep.subr.bf16.mxu0 %v1793_v26 }
  0x9d   :  { %1608 = vmatpush3.bf16.msra.mxu0 %v1794_v27 }
  0x9e   :  { %1609 = vmatprep.subr.bf16.mxu0 %v1795_v28 }
 0x14c   :  { %v1729_v58 = vpop.f32.mrf.mxu0 }
 0x14d   :  { %v194_v63 = vadd.f32 %v1729_v58, %v1465_v59 }
 0x14e   :  { %v185_v60 = vpop.f32.mrf.mxu0 }
 0x14f   :  { %v186_v61 = vadd.f32 %v1465_v59, %v185_v60  ;;  %v202_v7 = vmax.f32 %v194_v63, 0.0 }
 0x150   :  { %v1730_v62 = vpop.f32.mrf.mxu0 }
 0x151   :  { %v200_v0 = vmax.f32 %v186_v61, 0.0  ;;  %v197_v2 = vadd.f32 %v1730_v62, %v1465_v59  ;;  %v206_v14 = vrot.slane %v202_v7, 7 }
 0x152   :  { %v188_v3 = vpop.f32.mrf.mxu0 }
 0x153   :  { %v203_v5 = vmax.f32 %v197_v2, 0.0  ;;  %v189_v6 = vadd.f32 %v1465_v59, %v188_v3  ;;  %v204_v8 = vrot.slane %v200_v0, 7 }
 0x154   :  { %v1735_v43 = vpop.f32.mrf.mxu0 }
 0x155   :  { %v207_v10 = vrot.slane %v203_v5, 7  ;;  %v201_v4 = vmax.f32 %v189_v6, 0.0  ;;  %v219_v17 = vpack.c.bf16 %v203_v5, %v202_v7 }
 0x156   :  { %v458_v44 = vpop.f32.mrf.mxu0 }
 0x157   :  { %v205_v9 = vrot.slane %v201_v4, 7  ;;  %v217_v11 = vpack.c.bf16 %v201_v4, %v200_v0  ;;  %v211_v12 = vsel %vm90_vm1, %v207_v10, %v204_v8  ;;  %v208_v20 = vsel %vm90_vm1, %v206_v14, %v207_v10 }
 0x158   :  { %v212_v13 = vmul.f32 %v1966_v32, %v211_v12  ;;  %v1796_v32 = vld [vmem:[#allocation2 + $0xa8] sm:$0xff]   ;;  %v1736_v48 = vpop.f32.mrf.mxu0  ;;  %v459_v57 = vadd.f32 %v1485_v51, %v458_v44  ;;  %v467_v4 = vadd.f32 %v1735_v43, %v1485_v51  ;;  %v1813_v43 = vld [vmem:[#allocation2 + $0x160] sm:$0xff]  }
 0x159   :  { %385 = vmatprep.mubr.bf16.mxu1 %v217_v11  ;;  %v210_v15 = vsel %vm90_vm1, %v204_v8, %v205_v9  ;;  %v209_v18 = vsel %vm90_vm1, %v205_v9, %v206_v14  ;;  %1610 = vmatpush3.bf16.msra.mxu0 %v1796_v32  ;;  %v1814_v44 = vld [vmem:[#allocation2 + $0x120] sm:$0xff]  }
 0x15a   :  { %v216_v16 = vpack.c.bf16 %v210_v15, %v212_v13  ;;  %v214_v19 = vmul.f32 %v1971_v35, %v209_v18  ;;  %1611 = vmatprep.subr.bf16.mxu0 %v1797_v33  ;;  %v1799_v35 = vld [vmem:[#allocation2 + $0xd8] sm:$0xff]   ;;  %v461_v54 = vpop.f32.mrf.mxu0  ;;  %v470_v13 = vadd.f32 %v1736_v48, %v1485_v51  ;;  %v2012_v18 = vsel %vm490_vm7, 1.0, %v1886_v31  ;;  %v1818_v48 = vld [vmem:[#allocation2 + $0x110] sm:$0xff]  }
 0x15b   :  { %v462_v60 = vadd.f32 %v1485_v51, %v461_v54  ;;  %v2032_v33 = vsel %vm492_vm9, 1.0, %v1886_v31  ;;  %v1490_v54 = vld [vmem:[%s2123_s2 + $0x3] ss:$0 sm:$0xff] }
 0x15c   :  { %386 = vmatmul.mubr.bf16.vlgmr.msra.gmra.mxu1 %v216_v16  ;;  %v218_v21 = vpack.c.bf16 %v208_v20, %v214_v19 }
 0x15d   :  { %393 = vmatprep.mubr.bf16.mxu1 %v219_v17  ;;  %1612 = vmatpush3.bf16.msra.mxu0 %v1798_v34 }
 0x15e   :  { %1613 = vmatprep.subr.bf16.mxu0 %v1799_v35  ;;  %1632 = vmatpush3.bf16.msra.mxu1 %v1806_v42  ;;  %v1812_v42 = vld [vmem:[#allocation2 + $0x128] sm:$0xff]  }
 0x161   :  { %1614 = vmatpush3.bf16.msra.mxu0 %v1800_v36 }
 0x162   :  { %1615 = vmatprep.subr.bf16.mxu0 %v1801_v37  ;;  %v1807_v37 = vld [vmem:[#allocation2 + $0x178] sm:$0xff]  }
 0x163   :  { %1633 = vmatprep.subr.bf16.mxu1 %v1807_v37  ;;  %v1827_v37 = vld [vmem:[#allocation2 + $0x1e8] sm:$0xff]  }
 0x164   :  { %394 = vmatmul.mubr.bf16.gmra.mxu1 %v218_v21 }
 0x165   :  { %1616 = vmatpush3.bf16.msra.mxu0 %v1802_v38  ;;  %v1808_v38 = vld [vmem:[#allocation2 + $0x138] sm:$0xff]  }
 0x166   :  { %1617 = vmatprep.subr.bf16.mxu0 %v1803_v39  ;;  %1634 = vmatpush3.bf16.msra.mxu1 %v1808_v38  ;;  %v1809_v39 = vld [vmem:[#allocation2 + $0x170] sm:$0xff]   ;;  %v1828_v38 = vld [vmem:[#allocation2 + $0x1a8] sm:$0xff]  }
 0x167   :  { %1635 = vmatprep.subr.bf16.mxu1 %v1809_v39  ;;  %v1829_v39 = vld [vmem:[#allocation2 + $0x1e0] sm:$0xff]  }
 0x169   :  { %1618 = vmatpush3.bf16.msra.mxu0 %v1804_v40  ;;  %v1810_v40 = vld [vmem:[#allocation2 + $0x130] sm:$0xff]  }
 0x16a   :  { %1636 = vmatpush3.bf16.msra.mxu1 %v1810_v40  ;;  %v1831_v40 = vld [vmem:[#allocation2 + $0x1d8] sm:$0xff]  }
 0x16b   :  { %1637 = vmatprep.subr.bf16.mxu1 %v1811_v41  ;;  %v1832_v41 = vld [vmem:[#allocation2 + $0x198] sm:$0xff]  }
 0x16e   :  { %1638 = vmatpush3.bf16.msra.mxu1 %v1812_v42  ;;  %v1833_v42 = vld [vmem:[#allocation2 + $0x1d0] sm:$0xff]  }
 0x16f   :  { %1639 = vmatprep.subr.bf16.mxu1 %v1813_v43  ;;  %v1834_v43 = vld [vmem:[#allocation2 + $0x190] sm:$0xff]  }
 0x172   :  { %1640 = vmatpush3.bf16.msra.mxu1 %v1814_v44  ;;  %v1835_v44 = vld [vmem:[#allocation2 + $0x1c8] sm:$0xff]  }
 0x21c   :  { %v1588_v45 = vpop.f32.mrf.mxu1 }
 0x21e   :  { %v1589_v47 = vpop.f32.mrf.mxu1 }
 0x21f   :  { %v1590_v49 = vadd.f32 %v1589_v47, %v1588_v45  ;;  %v1815_v45 = vld [vmem:[#allocation2 + $0x158] sm:$0xff]   ;;  %v1817_v47 = vld [vmem:[#allocation2 + $0x150] sm:$0xff]  }
 0x220   :  { %v1591_v50 = vpop.f32.mrf.mxu1  ;;  %1641 = vmatprep.subr.bf16.mxu1 %v1815_v45  ;;  %v1836_v45 = vld [vmem:[#allocation2 + $0x188] sm:$0xff]  }
 0x221   :  { %v388_v52 = vadd.f32 %v1590_v49, %v1468_v46  ;;  %v1819_v49 = vld [vmem:[#allocation2 + $0x148] sm:$0xff]  }
 0x222   :  { %v1592_v53 = vpop.f32.mrf.mxu1 }
 0x223   :  { %v402_v55 = vmax.f32 %v388_v52, 0.0  ;;  %v1593_v56 = vadd.f32 %v1592_v53, %v1591_v50  ;;  %v1820_v50 = vld [vmem:[#allocation2 + $0x108] sm:$0xff]  }
 0x224   :  { %v1594_v58 = vpop.f32.mrf.mxu1 }
 0x225   :  { %v391_v59 = vadd.f32 %v1593_v56, %v1468_v46  ;;  %v473_v63 = vadd.f32 %v459_v57, %v402_v55 }
 0x226   :  { %v1595_v61 = vpop.f32.mrf.mxu1 }
 0x227   :  { %v403_v62 = vmax.f32 %v391_v59, 0.0  ;;  %v1596_v0 = vadd.f32 %v1595_v61, %v1594_v58  ;;  %v2002_v7 = vmax.f32 %v473_v63, 0.0 }
 0x228   :  { %v1597_v2 = vpop.f32.mrf.mxu1 }
 0x229   :  { %v396_v3 = vadd.f32 %v1596_v0, %v1468_v46  ;;  %v474_v5 = vadd.f32 %v462_v60, %v403_v62  ;;  %v481_v19 = vrot.slane %v2002_v7, 6 }
 0x22a   :  { %v1598_v6 = vpop.f32.mrf.mxu1 }
 0x22b   :  { %v2004_v8 = vmax.f32 %v474_v5, 0.0  ;;  %v1599_v10 = vadd.f32 %v1598_v6, %v1597_v2  ;;  %v404_v9 = vmax.f32 %v396_v3, 0.0 }
 0x22d   :  { %v399_v11 = vadd.f32 %v1599_v10, %v1468_v46  ;;  %v507_v12 = vpack.c.bf16 %v2004_v8, %v2002_v7  ;;  %v475_v15 = vadd.f32 %v467_v4, %v404_v9  ;;  %v482_v21 = vrot.slane %v2004_v8, 6  ;;  %v1816_v46 = vld [vmem:[#allocation2 + $0x118] sm:$0xff]  }
 0x22e   :  { %1642 = vmatpush3.bf16.msra.mxu1 %v1816_v46  ;;  %v1837_v46 = vld [vmem:[#allocation2 + $0x280] sm:$0xff]  }
 0x22f   :  { %v405_v14 = vmax.f32 %v399_v11, 0.0  ;;  %675 = vmatprep.mubr.bf16.mxu0 %v507_v12  ;;  %v2015_v20 = vmax.f32 %v475_v15, 0.0  ;;  %v488_v25 = vsel %vm485_vm8, %v481_v19, %v482_v21  ;;  %1643 = vmatprep.subr.bf16.mxu1 %v1817_v47  ;;  %v1838_v47 = vld [vmem:[#allocation2 + $0x240] sm:$0xff]  }
 0x231   :  { %v476_v16 = vadd.f32 %v470_v13, %v405_v14  ;;  %v483_v26 = vrot.slane %v2015_v20, 6 }
 0x232   :  { %1644 = vmatpush3.bf16.msra.mxu1 %v1818_v48 }
 0x233   :  { %v2009_v17 = vmax.f32 %v476_v16, 0.0  ;;  %v487_v32 = vsel %vm485_vm8, %v482_v21, %v483_v26  ;;  %1645 = vmatprep.subr.bf16.mxu1 %v1819_v49  ;;  %v1507_v49 = vld [vmem:[%s2123_s2 + $0x4] ss:$0 sm:$0xff] }
 0x234   :  { %v504_v35 = vmul.f32 %v2032_v33, %v487_v32  ;;  %v1823_v32 = vld [vmem:[#allocation2 + $0x1f8] sm:$0xff]  }
 0x235   :  { %v484_v22 = vrot.slane %v2009_v17, 6  ;;  %v509_v28 = vpack.c.bf16 %v2009_v17, %v2015_v20 }
 0x236   :  { %1646 = vmatpush3.bf16.msra.mxu1 %v1820_v50 }
 0x237   :  { %v489_v23 = vsel %vm485_vm8, %v484_v22, %v481_v19  ;;  %v486_v34 = vsel %vm485_vm8, %v483_v26, %v484_v22  ;;  %1687 = vmatprep.subr.bf16.mxu1 %v1837_v46 }
 0x238   :  { %v502_v24 = vmul.f32 %v2012_v18, %v489_v23  ;;  %v508_v36 = vpack.c.bf16 %v486_v34, %v504_v35  ;;  %v1824_v34 = vld [vmem:[#allocation2 + $0x1b8] sm:$0xff]   ;;  %v1825_v35 = vld [vmem:[#allocation2 + $0x1f0] sm:$0xff]  }
 0x23a   :  { %v506_v27 = vpack.c.bf16 %v488_v25, %v502_v24 }
 0x23c   :  { %676 = vmatmul.mubr.bf16.vlgmr.msra.gmra.mxu0 %v506_v27 }
 0x23d   :  { %683 = vmatprep.mubr.bf16.mxu0 %v509_v28  ;;  %v1821_v28 = vld [vmem:[#allocation2 + $0x200] sm:$0xff]  }
 0x23e   :  { %1659 = vmatprep.subr.bf16.mxu0 %v1821_v28 }
 0x244   :  { %684 = vmatmul.mubr.bf16.gmra.mxu0 %v508_v36  ;;  %v1826_v36 = vld [vmem:[#allocation2 + $0x1b0] sm:$0xff]  }
 0x2fc   :  { %v1619_v51 = vpop.f32.mrf.mxu0 }
 0x2fe   :  { %v1620_v52 = vpop.f32.mrf.mxu0 }
 0x2ff   :  { %v1621_v53 = vadd.f32 %v1620_v52, %v1619_v51 }
 0x300   :  { %v1622_v55 = vpop.f32.mrf.mxu0 }
 0x301   :  { %v678_v57 = vadd.f32 %v1621_v53, %v1490_v54 }
 0x302   :  { %v1623_v56 = vpop.f32.mrf.mxu0 }
 0x303   :  { %v1624_v58 = vadd.f32 %v1623_v56, %v1622_v55  ;;  %v692_v62 = vmax.f32 %v678_v57, 0.0 }
 0x304   :  { %v1625_v59 = vpop.f32.mrf.mxu0 }
 0x305   :  { %v681_v60 = vadd.f32 %v1624_v58, %v1490_v54  ;;  %v696_v11 = vrot.slane %v692_v62, 6 }
 0x306   :  { %v1626_v61 = vpop.f32.mrf.mxu0 }
 0x307   :  { %v693_v63 = vmax.f32 %v681_v60, 0.0  ;;  %v1627_v2 = vadd.f32 %v1626_v61, %v1625_v59 }
 0x308   :  { %v1628_v0 = vpop.f32.mrf.mxu0 }
 0x309   :  { %v709_v3 = vpack.c.bf16 %v693_v63, %v692_v62  ;;  %v686_v10 = vadd.f32 %v1627_v2, %v1490_v54  ;;  %v697_v12 = vrot.slane %v693_v63, 6 }
 0x30a   :  { %v1629_v5 = vpop.f32.mrf.mxu0 }
 0x30b   :  { %v1630_v6 = vadd.f32 %v1629_v5, %v1628_v0  ;;  %877 = vmatprep.mubr.bf16.mxu1 %v709_v3  ;;  %v694_v13 = vmax.f32 %v686_v10, 0.0  ;;  %v702_v19 = vsel %vm485_vm8, %v696_v11, %v697_v12 }
 0x30d   :  { %v689_v4 = vadd.f32 %v1630_v6, %v1490_v54  ;;  %v698_v21 = vrot.slane %v694_v13, 6 }
 0x30f   :  { %v695_v9 = vmax.f32 %v689_v4, 0.0  ;;  %v701_v24 = vsel %vm485_vm8, %v697_v12, %v698_v21 }
 0x310   :  { %v706_v26 = vmul.f32 %v2032_v33, %v701_v24  ;;  %v1830_v33 = vld [vmem:[#allocation2 + $0x1a0] sm:$0xff]  }
 0x311   :  { %v699_v14 = vrot.slane %v695_v9, 6  ;;  %v711_v23 = vpack.c.bf16 %v695_v9, %v694_v13 }
 0x313   :  { %v703_v15 = vsel %vm485_vm8, %v699_v14, %v696_v11  ;;  %v700_v25 = vsel %vm485_vm8, %v698_v21, %v699_v14  ;;  %v2067_v14 = vsel %vm915_vm10, 1.0, %v1886_v31 }
 0x314   :  { %v704_v16 = vmul.f32 %v2012_v18, %v703_v15  ;;  %v710_v27 = vpack.c.bf16 %v700_v25, %v706_v26  ;;  %v1822_v18 = vld [vmem:[#allocation2 + $0x1c0] sm:$0xff]   ;;  %v2087_v26 = vsel %vm917_vm12, 1.0, %v1886_v31 }
 0x315   :  { %1660 = vmatpush3.bf16.msra.mxu0 %v1822_v18  ;;  %v1845_v31 = vld [vmem:[#allocation2 + $0x260] sm:$0xff]  }
 0x316   :  { %v708_v22 = vpack.c.bf16 %v702_v19, %v704_v16  ;;  %1661 = vmatprep.subr.bf16.mxu0 %v1823_v32  ;;  %v1839_v32 = vld [vmem:[#allocation2 + $0x278] sm:$0xff]  }
 0x318   :  { %878 = vmatmul.mubr.bf16.vlgmr.msra.gmra.mxu1 %v708_v22 }
 0x319   :  { %885 = vmatprep.mubr.bf16.mxu1 %v711_v23  ;;  %1662 = vmatpush3.bf16.msra.mxu0 %v1824_v34  ;;  %v1841_v34 = vld [vmem:[#allocation2 + $0x270] sm:$0xff]  }
 0x31a   :  { %1663 = vmatprep.subr.bf16.mxu0 %v1825_v35  ;;  %1688 = vmatpush3.bf16.msra.mxu1 %v1838_v47  ;;  %v1842_v35 = vld [vmem:[#allocation2 + $0x230] sm:$0xff]  }
 0x31b   :  { %1689 = vmatprep.subr.bf16.mxu1 %v1839_v32 }
 0x31d   :  { %1664 = vmatpush3.bf16.msra.mxu0 %v1826_v36  ;;  %v1843_v36 = vld [vmem:[#allocation2 + $0x268] sm:$0xff]  }
 0x31e   :  { %1665 = vmatprep.subr.bf16.mxu0 %v1827_v37  ;;  %1690 = vmatpush3.bf16.msra.mxu1 %v1840_v30  ;;  %v1844_v37 = vld [vmem:[#allocation2 + $0x228] sm:$0xff]  }
 0x31f   :  { %1691 = vmatprep.subr.bf16.mxu1 %v1841_v34 }
 0x320   :  { %886 = vmatmul.mubr.bf16.gmra.mxu1 %v710_v27 }
 0x321   :  { %1666 = vmatpush3.bf16.msra.mxu0 %v1828_v38  ;;  %v1846_v38 = vld [vmem:[#allocation2 + $0x220] sm:$0xff]  }
 0x322   :  { %1667 = vmatprep.subr.bf16.mxu0 %v1829_v39  ;;  %1692 = vmatpush3.bf16.msra.mxu1 %v1842_v35  ;;  %v1847_v39 = vld [vmem:[#allocation2 + $0x258] sm:$0xff]  }
 0x323   :  { %1693 = vmatprep.subr.bf16.mxu1 %v1843_v36 }
 0x325   :  { %1668 = vmatpush3.bf16.msra.mxu0 %v1830_v33  ;;  %v1848_v33 = vld [vmem:[#allocation2 + $0x218] sm:$0xff]  }
 0x326   :  { %1669 = vmatprep.subr.bf16.mxu0 %v1831_v40  ;;  %1694 = vmatpush3.bf16.msra.mxu1 %v1844_v37  ;;  %v1849_v40 = vld [vmem:[#allocation2 + $0x250] sm:$0xff]  }
 0x327   :  { %1695 = vmatprep.subr.bf16.mxu1 %v1845_v31 }
 0x329   :  { %1670 = vmatpush3.bf16.msra.mxu0 %v1832_v41  ;;  %v1850_v41 = vld [vmem:[#allocation2 + $0x210] sm:$0xff]  }
 0x32a   :  { %1671 = vmatprep.subr.bf16.mxu0 %v1833_v42  ;;  %1696 = vmatpush3.bf16.msra.mxu1 %v1846_v38  ;;  %v1851_v42 = vld [vmem:[#allocation2 + $0x248] sm:$0xff]  }
 0x32b   :  { %1697 = vmatprep.subr.bf16.mxu1 %v1847_v39 }
 0x32d   :  { %1672 = vmatpush3.bf16.msra.mxu0 %v1834_v43  ;;  %v1852_v43 = vld [vmem:[#allocation2 + $0x208] sm:$0xff]  }
 0x32e   :  { %1673 = vmatprep.subr.bf16.mxu0 %v1835_v44  ;;  %1698 = vmatpush3.bf16.msra.mxu1 %v1848_v33  ;;  %v1853_v44 = vld [vmem:[#allocation2 + $0x2c0] sm:$0xff]  }
 0x32f   :  { %1699 = vmatprep.subr.bf16.mxu1 %v1849_v40 }
 0x331   :  { %1674 = vmatpush3.bf16.msra.mxu0 %v1836_v45  ;;  %v1854_v45 = vld [vmem:[#allocation2 + $0x2b8] sm:$0xff]  }
 0x332   :  { %1700 = vmatpush3.bf16.msra.mxu1 %v1850_v41  ;;  %1737 = vmatprep.subr.bf16.mxu0 %v1853_v44 }
 0x333   :  { %1701 = vmatprep.subr.bf16.mxu1 %v1851_v42 }
 0x336   :  { %1702 = vmatpush3.bf16.msra.mxu1 %v1852_v43 }
 0x3d8   :  { %v1647_v48 = vpop.f32.mrf.mxu1 }
 0x3da   :  { %v1648_v50 = vpop.f32.mrf.mxu1 }
 0x3db   :  { %v1649_v51 = vadd.f32 %v1648_v50, %v1647_v48 }
 0x3dc   :  { %v1650_v52 = vpop.f32.mrf.mxu1 }
 0x3dd   :  { %v880_v53 = vadd.f32 %v1649_v51, %v1507_v49 }
 0x3de   :  { %v1651_v54 = vpop.f32.mrf.mxu1 }
 0x3df   :  { %v894_v55 = vmax.f32 %v880_v53, 0.0  ;;  %v1652_v56 = vadd.f32 %v1651_v54, %v1650_v52 }
 0x3e0   :  { %v1653_v57 = vpop.f32.mrf.mxu1 }
 0x3e1   :  { %v883_v58 = vadd.f32 %v1652_v56, %v1507_v49  ;;  %v898_v60 = vadd.f32 %v894_v55, %v2002_v7 }
 0x3e2   :  { %v1654_v59 = vpop.f32.mrf.mxu1 }
 0x3e3   :  { %v895_v61 = vmax.f32 %v883_v58, 0.0  ;;  %v1655_v62 = vadd.f32 %v1654_v59, %v1653_v57  ;;  %v2055_v5 = vmax.f32 %v898_v60, 0.0 }
 0x3e4   :  { %v1656_v63 = vpop.f32.mrf.mxu1 }
 0x3e5   :  { %v899_v0 = vadd.f32 %v895_v61, %v2004_v8  ;;  %v888_v2 = vadd.f32 %v1655_v62, %v1507_v49  ;;  %v906_v15 = vrot.slane %v2055_v5, 4 }
 0x3e6   :  { %v1657_v3 = vpop.f32.mrf.mxu1 }
 0x3e7   :  { %v2057_v6 = vmax.f32 %v899_v0, 0.0  ;;  %v1658_v10 = vadd.f32 %v1657_v3, %v1656_v63  ;;  %v896_v4 = vmax.f32 %v888_v2, 0.0 }
 0x3e9   :  { %v891_v9 = vadd.f32 %v1658_v10, %v1507_v49  ;;  %v932_v11 = vpack.c.bf16 %v2057_v6, %v2055_v5  ;;  %v900_v7 = vadd.f32 %v896_v4, %v2015_v20  ;;  %v907_v16 = vrot.slane %v2057_v6, 4  ;;  %v1526_v49 = vld [vmem:[%s2123_s2 + $0x5] ss:$0 sm:$0xff] }
 0x3eb   :  { %v897_v12 = vmax.f32 %v891_v9, 0.0  ;;  %1100 = vmatprep.mubr.bf16.mxu0 %v932_v11  ;;  %v2071_v19 = vmax.f32 %v900_v7, 0.0  ;;  %v913_v20 = vsel %vm910_vm11, %v906_v15, %v907_v16 }
 0x3ed   :  { %v901_v13 = vadd.f32 %v897_v12, %v2009_v17  ;;  %v908_v22 = vrot.slane %v2071_v19, 4 }
 0x3ef   :  { %v2064_v8 = vmax.f32 %v901_v13, 0.0  ;;  %v912_v25 = vsel %vm910_vm11, %v907_v16, %v908_v22 }
 0x3f0   :  { %v929_v28 = vmul.f32 %v2087_v26, %v912_v25  ;;  %v1858_v25 = vld [vmem:[#allocation2 + $0x298] sm:$0xff]  }
 0x3f1   :  { %v909_v21 = vrot.slane %v2064_v8, 4  ;;  %v934_v24 = vpack.c.bf16 %v2064_v8, %v2071_v19 }
 0x3f3   :  { %v914_v17 = vsel %vm910_vm11, %v909_v21, %v906_v15  ;;  %v911_v27 = vsel %vm910_vm11, %v908_v22, %v909_v21 }
 0x3f4   :  { %v927_v29 = vmul.f32 %v2067_v14, %v914_v17  ;;  %v933_v18 = vpack.c.bf16 %v911_v27, %v929_v28  ;;  %v1859_v27 = vld [vmem:[#allocation2 + $0x290] sm:$0xff]   ;;  %v1543_v28 = vld [vmem:[%s2123_s2 + $0x6] ss:$0 sm:$0xff] }
 0x3f6   :  { %v931_v23 = vpack.c.bf16 %v913_v20, %v927_v29 }
 0x3f8   :  { %1101 = vmatmul.mubr.bf16.vlgmr.msra.gmra.mxu0 %v931_v23  ;;  %v1855_v23 = vld [vmem:[#allocation2 + $0x2b0] sm:$0xff]  }
 0x3f9   :  { %1108 = vmatprep.mubr.bf16.mxu0 %v934_v24  ;;  %1738 = vmatpush3.bf16.msra.mxu0 %v1853_v44  ;;  %v1857_v24 = vld [vmem:[#allocation2 + $0x2a0] sm:$0xff]  }
 0x3fa   :  { %1739 = vmatprep.subr.bf16.mxu0 %v1854_v45 }
 0x3fd   :  { %1740 = vmatpush3.bf16.msra.mxu0 %v1854_v45 }
 0x3fe   :  { %1741 = vmatprep.subr.bf16.mxu0 %v1855_v23 }
 0x400   :  { %1109 = vmatmul.mubr.bf16.gmra.mxu0 %v933_v18 }
 0x401   :  { %1742 = vmatpush3.bf16.msra.mxu0 %v1855_v23 }
 0x4b8   :  { %v1675_v46 = vpop.f32.mrf.mxu0 }
 0x4ba   :  { %v1676_v47 = vpop.f32.mrf.mxu0 }
 0x4bb   :  { %v1677_v48 = vadd.f32 %v1676_v47, %v1675_v46 }
 0x4bc   :  { %v1678_v50 = vpop.f32.mrf.mxu0 }
 0x4bd   :  { %v1103_v52 = vadd.f32 %v1677_v48, %v1526_v49 }
 0x4be   :  { %v1679_v51 = vpop.f32.mrf.mxu0 }
 0x4bf   :  { %v1680_v53 = vadd.f32 %v1679_v51, %v1678_v50  ;;  %v1117_v57 = vmax.f32 %v1103_v52, 0.0 }
 0x4c0   :  { %v1681_v54 = vpop.f32.mrf.mxu0 }
 0x4c1   :  { %v1106_v55 = vadd.f32 %v1680_v53, %v1526_v49  ;;  %v1121_v10 = vrot.slane %v1117_v57, 4 }
 0x4c2   :  { %v1682_v56 = vpop.f32.mrf.mxu0 }
 0x4c3   :  { %v1118_v58 = vmax.f32 %v1106_v55, 0.0  ;;  %v1683_v60 = vadd.f32 %v1682_v56, %v1681_v54 }
 0x4c4   :  { %v1684_v59 = vpop.f32.mrf.mxu0 }
 0x4c5   :  { %v1134_v61 = vpack.c.bf16 %v1118_v58, %v1117_v57  ;;  %v1111_v0 = vadd.f32 %v1683_v60, %v1526_v49  ;;  %v1122_v4 = vrot.slane %v1118_v58, 4  ;;  %v1560_v58 = vld [vmem:[%s2123_s2 + $0x7] ss:$0 sm:$0xff] }
 0x4c6   :  { %v1685_v62 = vpop.f32.mrf.mxu0 }
 0x4c7   :  { %v1686_v63 = vadd.f32 %v1685_v62, %v1684_v59  ;;  %1302 = vmatprep.mubr.bf16.mxu1 %v1134_v61  ;;  %v1119_v9 = vmax.f32 %v1111_v0, 0.0  ;;  %v1127_v13 = vsel %vm910_vm11, %v1121_v10, %v1122_v4 }
 0x4c9   :  { %v1114_v2 = vadd.f32 %v1686_v63, %v1526_v49  ;;  %v1123_v15 = vrot.slane %v1119_v9, 4 }
 0x4cb   :  { %v1120_v3 = vmax.f32 %v1114_v2, 0.0  ;;  %v1126_v17 = vsel %vm910_vm11, %v1122_v4, %v1123_v15 }
 0x4cc   :  { %v1131_v20 = vmul.f32 %v2087_v26, %v1126_v17 }
 0x4cd   :  { %v1124_v11 = vrot.slane %v1120_v3, 4  ;;  %v1136_v21 = vpack.c.bf16 %v1120_v3, %v1119_v9 }
 0x4cf   :  { %v1128_v12 = vsel %vm910_vm11, %v1124_v11, %v1121_v10  ;;  %v1125_v29 = vsel %vm910_vm11, %v1123_v15, %v1124_v11 }
 0x4d0   :  { %v1129_v7 = vmul.f32 %v2067_v14, %v1128_v12  ;;  %v1135_v22 = vpack.c.bf16 %v1125_v29, %v1131_v20  ;;  %v1856_v14 = vld [vmem:[#allocation2 + $0x2a8] sm:$0xff]  }
 0x4d1   :  { %1743 = vmatprep.subr.bf16.mxu0 %v1856_v14 }
 0x4d2   :  { %v1133_v16 = vpack.c.bf16 %v1127_v13, %v1129_v7  ;;  %1744 = vmatpush3.bf16.msra.mxu0 %v1856_v14 }
 0x4d3   :  { %1745 = vmatprep.subr.bf16.mxu0 %v1857_v24 }
 0x4d4   :  { %1303 = vmatmul.mubr.bf16.vlgmr.msra.gmra.mxu1 %v1133_v16 }
 0x4d5   :  { %1310 = vmatprep.mubr.bf16.mxu1 %v1136_v21 }
 0x4d6   :  { %1746 = vmatpush3.bf16.msra.mxu0 %v1857_v24 }
 0x4d7   :  { %1747 = vmatprep.subr.bf16.mxu0 %v1858_v25 }
 0x4da   :  { %1748 = vmatpush3.bf16.msra.mxu0 %v1858_v25 }
 0x4db   :  { %1749 = vmatprep.subr.bf16.mxu0 %v1859_v27 }
 0x4dc   :  { %1311 = vmatmul.mubr.bf16.gmra.mxu1 %v1135_v22 }
 0x4de   :  { %1750 = vmatpush3.bf16.msra.mxu0 %v1859_v27 }
 0x4df   :  { %1751 = vmatprep.subr.bf16.mxu0 %v1860_v1 }
 0x4e2   :  { %1752 = vmatpush3.bf16.msra.mxu0 %v1860_v1 }
 0x594   :  { %v1703_v26 = vpop.f32.mrf.mxu1 }
 0x596   :  { %v1704_v18 = vpop.f32.mrf.mxu1 }
 0x597   :  { %v1705_v32 = vadd.f32 %v1704_v18, %v1703_v26 }
 0x598   :  { %v1706_v30 = vpop.f32.mrf.mxu1 }
 0x599   :  { %v1305_v34 = vadd.f32 %v1705_v32, %v1543_v28 }
 0x59a   :  { %v1707_v35 = vpop.f32.mrf.mxu1 }
 0x59b   :  { %v1319_v36 = vmax.f32 %v1305_v34, 0.0  ;;  %v1708_v37 = vadd.f32 %v1707_v35, %v1706_v30 }
 0x59c   :  { %v1709_v31 = vpop.f32.mrf.mxu1 }
 0x59d   :  { %v1308_v38 = vadd.f32 %v1708_v37, %v1543_v28  ;;  %v1323_v33 = vadd.f32 %v1319_v36, %v2055_v5 }
 0x59e   :  { %v1710_v39 = vpop.f32.mrf.mxu1 }
 0x59f   :  { %v1320_v40 = vmax.f32 %v1308_v38, 0.0  ;;  %v1711_v41 = vadd.f32 %v1710_v39, %v1709_v31  ;;  %v1327_v46 = vmax.f32 %v1323_v33, 0.0 }
 0x5a0   :  { %v1712_v42 = vpop.f32.mrf.mxu1 }
 0x5a1   :  { %v1324_v43 = vadd.f32 %v1320_v40, %v2057_v6  ;;  %v1313_v44 = vadd.f32 %v1711_v41, %v1543_v28 }
 0x5a2   :  { %v1713_v45 = vpop.f32.mrf.mxu1 }
 0x5a3   :  { %v1328_v47 = vmax.f32 %v1324_v43, 0.0  ;;  %v1321_v48 = vmax.f32 %v1313_v44, 0.0  ;;  %v1714_v49 = vadd.f32 %v1713_v45, %v1712_v42 }
 0x5a5   :  { %v1316_v50 = vadd.f32 %v1714_v49, %v1543_v28  ;;  %v1331_v51 = vpack.c.bf16 %v1328_v47, %v1327_v46  ;;  %v1325_v52 = vadd.f32 %v1321_v48, %v2071_v19 }
 0x5a7   :  { %v1322_v53 = vmax.f32 %v1316_v50, 0.0  ;;  %1753 = vmatprep.mubr.bf16.mxu0 %v1331_v51  ;;  %v1329_v5 = vmax.f32 %v1325_v52, 0.0 }
 0x5a9   :  { %v1326_v54 = vadd.f32 %v1322_v53, %v2064_v8 }
 0x5ab   :  { %v1330_v55 = vmax.f32 %v1326_v54, 0.0 }
 0x5ad   :  { %v1332_v56 = vpack.c.bf16 %v1330_v55, %v1329_v5 }
 0x5af   :  { %1754 = vmatmul.mubr.bf16.vlgmr.msra.gmra.mxu0 %v1332_v56 }
 0x66f   :  { %v1755_v57 = vpop.f32.mrf.mxu0 }
 0x671   :  { %v1436_v6 = vpop.f32.mrf.mxu0 }
 0x673   :  { %v1756_v59 = vpop.f32.mrf.mxu0 }
 0x674   :  { %v1446_v60 = vadd.f32 %v1756_v59, %v1560_v58 }
 0x675   :  { %v1438_v61 = vpop.f32.mrf.mxu0 }
 0x676   :  { %v1451_v19 = vrot.slane %v1446_v60, 7  ;;  %v1439_v62 = vadd.f32 %v1560_v58, %v1438_v61 }
 0x678   :  { %1457 = vst.msk [vmem:[%s2124_s3 + $0x1] sm:$0x1] %vm1456_vm13, %v1451_v19 }
 0x679   :  { %1455 = vst.msk [vmem:[%s2124_s3 - $0x7] sm:$0x80] %vm1454_vm14, %v1439_v62 }
 0x67a   :  { %1462 = vsyncpa [#allocation3], 1 }

</bundles_post_ra>
